<compile_context>
chip_gen: v5e
topology: v5e:2x2
jax: 0.10.0
libtpu: 0.0.40
codegen_flags: <defaults>
</compile_context>

<pallas_src>
import jax
import jax.numpy as jnp
from jax.experimental import pallas as pl
from jax.experimental.pallas import tpu as pltpu

BN_EPS = 1e-5
_LANE = 128
_SUBLANE = 8
_MAX_LANE_TILE = 4096


def _pad(v, m):
    return -(-v // m) * m


# --------------------------------------------------------------------------
# Kernels
# --------------------------------------------------------------------------
def _stats_kernel(x_ref, gram_ref, sum_ref):
    # x_ref:    (TN, C_in, TL)   one batch-group, one lane tile
    # gram_ref: (1, C_in, C_in)  resident per-group accumulator (sum x x^T)
    # sum_ref:  (1, C_in, 1)     resident per-group accumulator (sum x)
    l = pl.program_id(1)

    @pl.when(l == 0)
    def _():
        gram_ref[...] = jnp.zeros_like(gram_ref)
        sum_ref[...] = jnp.zeros_like(sum_ref)

    gram = gram_ref[0]
    s = sum_ref[0]
    for t in range(x_ref.shape[0]):          # static unroll over TN
        xt = x_ref[t]                        # (C_in, TL)
        # Gram update on the MXU: contract the lane axis (K = TL).
        gram = gram + jax.lax.dot_general(
            xt, xt, (((1,), (1,)), ((), ())),
            preferred_element_type=jnp.float32)
        s = s + jnp.sum(xt, axis=1, keepdims=True)   # tiny XLU reduce
    gram_ref[0] = gram
    sum_ref[0] = s


def _apply_kernel(x_ref, w_ref, shift_ref, o_ref):
    # x_ref:     (TN, C_in, TL)
    # w_ref:     (C_out, C_in)   BN scale already folded in
    # shift_ref: (C_out, 1)      = beta - scale * (W @ mean_x)
    # o_ref:     (TN, C_out, TL)
    w = w_ref[...]
    shift = shift_ref[...]
    for t in range(x_ref.shape[0]):          # static unroll over TN
        y = jnp.dot(w, x_ref[t], preferred_element_type=jnp.float32)
        o_ref[t] = jnp.maximum(y + shift, 0.0).astype(o_ref.dtype)


# --------------------------------------------------------------------------
# VMEM-budget-aware tile selection
# --------------------------------------------------------------------------
def _vmem_capacity_bytes():
    try:
        return int(pltpu.get_tpu_info().vmem_capacity_bytes)
    except Exception:
        return 64 << 20        # conservative fallback (v7x per-core)


def _phase2_bytes(tn, tl, c_in, c_out):
    # Double-buffered x/out tiles plus the small resident weight/shift blocks.
    x_tile = tn * _pad(c_in, _SUBLANE) * _pad(tl, _LANE) * 4
    o_tile = tn * _pad(c_out, _SUBLANE) * _pad(tl, _LANE) * 4
    consts = (_pad(c_out, _SUBLANE) * _pad(c_in, _LANE)
              + _pad(c_out, _SUBLANE) * _LANE) * 4
    return 2 * (x_tile + o_tile) + 2 * consts


def _pick_tiles(n, c_in, c_out, L, tile_n=None, tile_l=None):
    budget = int(_vmem_capacity_bytes() * 0.4)

    if tile_l is None:
        if L % _LANE:
            tl_cands = [L]                           # full-extent lane block
        else:
            hi = min(L, _MAX_LANE_TILE)
            tl_cands = [d for d in range(hi, _LANE - 1, -_LANE) if L % d == 0]
    else:
        assert L % tile_l == 0 and (tile_l % _LANE == 0 or tile_l == L)
        tl_cands = [tile_l]

    if tile_n is None:
        tn_cands = [t for t in (8, 4, 2, 1) if n % t == 0] if c_in <= 8 else [1]
    else:
        assert n % tile_n == 0
        tn_cands = [tile_n]

    for tl in tl_cands:                      # biggest lane tile first
        for tn in tn_cands:                  # then biggest batch pack
            if _phase2_bytes(tn, tl, c_in, c_out) <= budget:
                return tn, tl
    return tn_cands[-1], tl_cands[-1]


# --------------------------------------------------------------------------
# Wrapper
# --------------------------------------------------------------------------
def pointnet_layer(x, weight, bias, gamma, beta, *, tile_n=None, tile_l=None):
    """Conv1d(k=1) -> BatchNorm1d (training-mode batch stats) -> ReLU.

    x: (N, C_in, L) f32 -> (N, C_out, L) f32.
    """
    del bias  # cancels exactly inside the BatchNorm mean subtraction
    N, C_in, L = x.shape
    C_out = weight.shape[0]
    w2 = weight.reshape(C_out, C_in).astype(jnp.float32)

    TN, TL = _pick_tiles(N, C_in, C_out, L, tile_n=tile_n, tile_l=tile_l)
    num_g = N // TN
    num_l = L // TL
    inv_p = 1.0 / float(N * L)

    vmem_needed = _phase2_bytes(TN, TL, C_in, C_out)
    vmem_limit = int(min(_vmem_capacity_bytes() - (2 << 20),
                         max(2 * vmem_needed, 32 << 20)))

    # ---- Phase 1: C_in-scale sufficient statistics (Gram + sum), per group -
    gram_p, sum_p = pl.pallas_call(
        _stats_kernel,
        out_shape=(
            jax.ShapeDtypeStruct((num_g, C_in, C_in), jnp.float32),
            jax.ShapeDtypeStruct((num_g, C_in, 1), jnp.float32),
        ),
        grid=(num_g, num_l),
        in_specs=[pl.BlockSpec((TN, C_in, TL), lambda g, l: (g, 0, l))],
        out_specs=(
            pl.BlockSpec((1, C_in, C_in), lambda g, l: (g, 0, 0)),
            pl.BlockSpec((1, C_in, 1), lambda g, l: (g, 0, 0)),
        ),
        compiler_params=pltpu.CompilerParams(
            dimension_semantics=("parallel", "arbitrary"),
            vmem_limit_bytes=vmem_limit),
    )(x)

    # ---- Tiny wrapper math: derive the BN affine from (G, sum_x) -----------
    gram = jnp.sum(gram_p, axis=0)                    # (C_in, C_in)
    sx = jnp.sum(sum_p, axis=0)                       # (C_in, 1)
    mean_x = sx * inv_p
    cov_x = gram * inv_p - mean_x @ mean_x.T          # (C_in, C_in)
    mean_y = w2 @ mean_x                              # conv bias cancels here
    var_y = jnp.maximum(
        jnp.sum((w2 @ cov_x) * w2, axis=1, keepdims=True), 0.0)
    rstd = jax.lax.rsqrt(var_y + BN_EPS)
    scale = gamma.reshape(C_out, 1).astype(jnp.float32) * rstd
    shift = beta.reshape(C_out, 1).astype(jnp.float32) - mean_y * scale
    w_scaled = scale * w2                             # fold BN scale into W

    # ---- Phase 2: scaled conv + shift + ReLU, fully tiled & parallel -------
    out = pl.pallas_call(
        _apply_kernel,
        out_shape=jax.ShapeDtypeStruct((N, C_out, L), jnp.float32),
        grid=(num_g, num_l),
        in_specs=[
            pl.BlockSpec((TN, C_in, TL), lambda g, l: (g, 0, l)),
            pl.BlockSpec((C_out, C_in), lambda g, l: (0, 0)),
            pl.BlockSpec((C_out, 1), lambda g, l: (0, 0)),
        ],
        out_specs=pl.BlockSpec((TN, C_out, TL), lambda g, l: (g, 0, l)),
        compiler_params=pltpu.CompilerParams(
            dimension_semantics=("parallel", "parallel"),
            vmem_limit_bytes=vmem_limit),
    )(x, w_scaled, shift)

    return out


# --------------------------------------------------------------------------
if __name__ == "__main__":
    key = jax.random.PRNGKey(0)
    k_x, k_w, k_b, k_g, k_be = jax.random.split(key, 5)

    # PointNetLayer(3, 64) on a small point-cloud batch.
    N, C_in, C_out, L = 8, 3, 64, 512

    x = jax.random.normal(k_x, (N, C_in, L), dtype=jnp.float32)
    weight = jax.random.normal(k_w, (C_out, C_in, 1), dtype=jnp.float32) * 0.1
    bias = jax.random.normal(k_b, (C_out,), dtype=jnp.float32) * 0.1
    gamma = 1.0 + 0.1 * jax.random.normal(k_g, (C_out,), dtype=jnp.float32)
    beta = 0.1 * jax.random.normal(k_be, (C_out,), dtype=jnp.float32)

    # Pure-JAX reference with full PyTorch training-mode semantics (bias kept;
    # it cancels exactly inside the BatchNorm).
    y_ref = jnp.einsum("oc,ncl->nol", weight[..., 0], x) + bias[None, :, None]
    mean_r = jnp.mean(y_ref, axis=(0, 2), keepdims=True)
    var_r = jnp.mean((y_ref - mean_r) ** 2, axis=(0, 2), keepdims=True)
    y_ref = (y_ref - mean_r) * jax.lax.rsqrt(var_r + BN_EPS)
    y_ref = jnp.maximum(y_ref * gamma[None, :, None] + beta[None, :, None], 0.0)

    # Default (VMEM-budget-sized) tiling.
    out = pointnet_layer(x, weight, bias, gamma, beta)
    jax.block_until_ready(out)
    assert out.shape == (N, C_out, L)
    assert jnp.allclose(out, y_ref, atol=1e-4, rtol=1e-4)

    # Forced small tiles: exercises multi-step grids (resident accumulation
    # over the L axis in phase 1, many output tiles in phase 2).
    out_small = pointnet_layer(x, weight, bias, gamma, beta,
                               tile_n=2, tile_l=128)
    jax.block_until_ready(out_small)
    assert jnp.allclose(out_small, y_ref, atol=1e-4, rtol=1e-4)

    print("KERNEL_OK")
</pallas_src>

<mosaic_0001>
module attributes {stable_mosaic.version = 11 : i64} {
  func.func @_stats_kernel(%arg0: i32, %arg1: i32, %arg2: memref<8x3x512xf32, #tpu.memory_space<vmem>>, %arg3: memref<1x3x3xf32, #tpu.memory_space<vmem>>, %arg4: memref<1x3x1xf32, #tpu.memory_space<vmem>>) attributes {dimension_semantics = [#tpu.dimension_semantics<parallel>, #tpu.dimension_semantics<arbitrary>], iteration_bounds = array<i64: 1, 1>, scalar_prefetch = 0 : i64, scratch_operands = 0 : i64, tpu.core_type = #tpu.core_type<tc>, window_params = [{transform_indices = @transform_0, window_bounds = array<i64: 8, 3, 512>}, {transform_indices = @transform_1, window_bounds = array<i64: 1, 3, 3>}, {transform_indices = @transform_2, window_bounds = array<i64: 1, 3, 1>}]} {
    %c0_i32 = arith.constant 0 : i32
    %0 = arith.cmpi eq, %arg1, %c0_i32 : i32
    %1 = arith.extui %0 : i1 to i32
    %c0_i32_0 = arith.constant 0 : i32
    %2 = arith.cmpi ne, %1, %c0_i32_0 : i32
    scf.if %2 {
      %cst_44 = arith.constant 0.000000e+00 : f32
      %69 = vector.broadcast %cst_44 : f32 to vector<1x3x3xf32>
      %c0_45 = arith.constant 0 : index
      %c0_46 = arith.constant 0 : index
      %c0_47 = arith.constant 0 : index
      %70 = vector.load %arg3[%c0_45, %c0_46, %c0_47] : memref<1x3x3xf32, #tpu.memory_space<vmem>>, vector<1x3x3xf32>
      tpu.vector_store %arg3[%c0_45, %c0_46, %c0_47], %69 {strides = array<i32>} : memref<1x3x3xf32, #tpu.memory_space<vmem>>, vector<1x3x3xf32>,
      %cst_48 = arith.constant 0.000000e+00 : f32
      %71 = vector.broadcast %cst_48 : f32 to vector<1x3x1xf32>
      %c0_49 = arith.constant 0 : index
      %c0_50 = arith.constant 0 : index
      %c0_51 = arith.constant 0 : index
      %72 = vector.load %arg4[%c0_49, %c0_50, %c0_51] : memref<1x3x1xf32, #tpu.memory_space<vmem>>, vector<1x3x1xf32>
      tpu.vector_store %arg4[%c0_49, %c0_50, %c0_51], %71 {strides = array<i32>} : memref<1x3x1xf32, #tpu.memory_space<vmem>>, vector<1x3x1xf32>,
    } else {
    }
    %c0 = arith.constant 0 : index
    %c0_1 = arith.constant 0 : index
    %c0_2 = arith.constant 0 : index
    %3 = vector.load %arg3[%c0, %c0_1, %c0_2] : memref<1x3x3xf32, #tpu.memory_space<vmem>>, vector<1x3x3xf32>
    %4 = vector.shape_cast %3 : vector<1x3x3xf32> to vector<3x3xf32>
    %c0_3 = arith.constant 0 : index
    %c0_4 = arith.constant 0 : index
    %c0_5 = arith.constant 0 : index
    %5 = vector.load %arg4[%c0_3, %c0_4, %c0_5] : memref<1x3x1xf32, #tpu.memory_space<vmem>>, vector<1x3x1xf32>
    %6 = vector.shape_cast %5 : vector<1x3x1xf32> to vector<3x1xf32>
    %c0_6 = arith.constant 0 : index
    %c0_7 = arith.constant 0 : index
    %c0_8 = arith.constant 0 : index
    %7 = vector.load %arg2[%c0_6, %c0_7, %c0_8] : memref<8x3x512xf32, #tpu.memory_space<vmem>>, vector<1x3x512xf32>
    %8 = vector.shape_cast %7 : vector<1x3x512xf32> to vector<3x512xf32>
    %cst = arith.constant dense<0.000000e+00> : vector<3x3xf32>
    %9 = tpu.matmul %8, %8, %cst {dimension_numbers = #tpu.dot_dimension_numbers<[1], [1], [0], [0], [0, 0, 1, 0], [], []>} : vector<3x512xf32>, vector<3x512xf32>, vector<3x3xf32> -> vector<3x3xf32>
    %10 = arith.addf %4, %9 : vector<3x3xf32>
    %cst_9 = arith.constant dense<0.000000e+00> : vector<3xf32>
    %11 = vector.multi_reduction <add>, %8, %cst_9 [1] : vector<3x512xf32> to vector<3xf32>
    %12 = vector.shape_cast %11 : vector<3xf32> to vector<3x1xf32>
    %13 = arith.addf %6, %12 : vector<3x1xf32>
    %c1 = arith.constant 1 : index
    %c0_10 = arith.constant 0 : index
    %c0_11 = arith.constant 0 : index
    %14 = vector.load %arg2[%c1, %c0_10, %c0_11] : memref<8x3x512xf32, #tpu.memory_space<vmem>>, vector<1x3x512xf32>
    %15 = vector.shape_cast %14 : vector<1x3x512xf32> to vector<3x512xf32>
    %cst_12 = arith.constant dense<0.000000e+00> : vector<3x3xf32>
    %16 = tpu.matmul %15, %15, %cst_12 {dimension_numbers = #tpu.dot_dimension_numbers<[1], [1], [0], [0], [0, 0, 1, 0], [], []>} : vector<3x512xf32>, vector<3x512xf32>, vector<3x3xf32> -> vector<3x3xf32>
    %17 = arith.addf %10, %16 : vector<3x3xf32>
    %cst_13 = arith.constant dense<0.000000e+00> : vector<3xf32>
    %18 = vector.multi_reduction <add>, %15, %cst_13 [1] : vector<3x512xf32> to vector<3xf32>
    %19 = vector.shape_cast %18 : vector<3xf32> to vector<3x1xf32>
    %20 = arith.addf %13, %19 : vector<3x1xf32>
    %c2 = arith.constant 2 : index
    %c0_14 = arith.constant 0 : index
    %c0_15 = arith.constant 0 : index
    %21 = vector.load %arg2[%c2, %c0_14, %c0_15] : memref<8x3x512xf32, #tpu.memory_space<vmem>>, vector<1x3x512xf32>
    %22 = vector.shape_cast %21 : vector<1x3x512xf32> to vector<3x512xf32>
    %cst_16 = arith.constant dense<0.000000e+00> : vector<3x3xf32>
    %23 = tpu.matmul %22, %22, %cst_16 {dimension_numbers = #tpu.dot_dimension_numbers<[1], [1], [0], [0], [0, 0, 1, 0], [], []>} : vector<3x512xf32>, vector<3x512xf32>, vector<3x3xf32> -> vector<3x3xf32>
    %24 = arith.addf %17, %23 : vector<3x3xf32>
    %cst_17 = arith.constant dense<0.000000e+00> : vector<3xf32>
    %25 = vector.multi_reduction <add>, %22, %cst_17 [1] : vector<3x512xf32> to vector<3xf32>
    %26 = vector.shape_cast %25 : vector<3xf32> to vector<3x1xf32>
    %27 = arith.addf %20, %26 : vector<3x1xf32>
    %c3 = arith.constant 3 : index
    %c0_18 = arith.constant 0 : index
    %c0_19 = arith.constant 0 : index
    %28 = vector.load %arg2[%c3, %c0_18, %c0_19] : memref<8x3x512xf32, #tpu.memory_space<vmem>>, vector<1x3x512xf32>
    %29 = vector.shape_cast %28 : vector<1x3x512xf32> to vector<3x512xf32>
    %cst_20 = arith.constant dense<0.000000e+00> : vector<3x3xf32>
    %30 = tpu.matmul %29, %29, %cst_20 {dimension_numbers = #tpu.dot_dimension_numbers<[1], [1], [0], [0], [0, 0, 1, 0], [], []>} : vector<3x512xf32>, vector<3x512xf32>, vector<3x3xf32> -> vector<3x3xf32>
    %31 = arith.addf %24, %30 : vector<3x3xf32>
    %cst_21 = arith.constant dense<0.000000e+00> : vector<3xf32>
    %32 = vector.multi_reduction <add>, %29, %cst_21 [1] : vector<3x512xf32> to vector<3xf32>
    %33 = vector.shape_cast %32 : vector<3xf32> to vector<3x1xf32>
    %34 = arith.addf %27, %33 : vector<3x1xf32>
    %c4 = arith.constant 4 : index
    %c0_22 = arith.constant 0 : index
    %c0_23 = arith.constant 0 : index
    %35 = vector.load %arg2[%c4, %c0_22, %c0_23] : memref<8x3x512xf32, #tpu.memory_space<vmem>>, vector<1x3x512xf32>
    %36 = vector.shape_cast %35 : vector<1x3x512xf32> to vector<3x512xf32>
    %cst_24 = arith.constant dense<0.000000e+00> : vector<3x3xf32>
    %37 = tpu.matmul %36, %36, %cst_24 {dimension_numbers = #tpu.dot_dimension_numbers<[1], [1], [0], [0], [0, 0, 1, 0], [], []>} : vector<3x512xf32>, vector<3x512xf32>, vector<3x3xf32> -> vector<3x3xf32>
    %38 = arith.addf %31, %37 : vector<3x3xf32>
    %cst_25 = arith.constant dense<0.000000e+00> : vector<3xf32>
    %39 = vector.multi_reduction <add>, %36, %cst_25 [1] : vector<3x512xf32> to vector<3xf32>
    %40 = vector.shape_cast %39 : vector<3xf32> to vector<3x1xf32>
    %41 = arith.addf %34, %40 : vector<3x1xf32>
    %c5 = arith.constant 5 : index
    %c0_26 = arith.constant 0 : index
    %c0_27 = arith.constant 0 : index
    %42 = vector.load %arg2[%c5, %c0_26, %c0_27] : memref<8x3x512xf32, #tpu.memory_space<vmem>>, vector<1x3x512xf32>
    %43 = vector.shape_cast %42 : vector<1x3x512xf32> to vector<3x512xf32>
    %cst_28 = arith.constant dense<0.000000e+00> : vector<3x3xf32>
    %44 = tpu.matmul %43, %43, %cst_28 {dimension_numbers = #tpu.dot_dimension_numbers<[1], [1], [0], [0], [0, 0, 1, 0], [], []>} : vector<3x512xf32>, vector<3x512xf32>, vector<3x3xf32> -> vector<3x3xf32>
    %45 = arith.addf %38, %44 : vector<3x3xf32>
    %cst_29 = arith.constant dense<0.000000e+00> : vector<3xf32>
    %46 = vector.multi_reduction <add>, %43, %cst_29 [1] : vector<3x512xf32> to vector<3xf32>
    %47 = vector.shape_cast %46 : vector<3xf32> to vector<3x1xf32>
    %48 = arith.addf %41, %47 : vector<3x1xf32>
    %c6 = arith.constant 6 : index
    %c0_30 = arith.constant 0 : index
    %c0_31 = arith.constant 0 : index
    %49 = vector.load %arg2[%c6, %c0_30, %c0_31] : memref<8x3x512xf32, #tpu.memory_space<vmem>>, vector<1x3x512xf32>
    %50 = vector.shape_cast %49 : vector<1x3x512xf32> to vector<3x512xf32>
    %cst_32 = arith.constant dense<0.000000e+00> : vector<3x3xf32>
    %51 = tpu.matmul %50, %50, %cst_32 {dimension_numbers = #tpu.dot_dimension_numbers<[1], [1], [0], [0], [0, 0, 1, 0], [], []>} : vector<3x512xf32>, vector<3x512xf32>, vector<3x3xf32> -> vector<3x3xf32>
    %52 = arith.addf %45, %51 : vector<3x3xf32>
    %cst_33 = arith.constant dense<0.000000e+00> : vector<3xf32>
    %53 = vector.multi_reduction <add>, %50, %cst_33 [1] : vector<3x512xf32> to vector<3xf32>
    %54 = vector.shape_cast %53 : vector<3xf32> to vector<3x1xf32>
    %55 = arith.addf %48, %54 : vector<3x1xf32>
    %c7 = arith.constant 7 : index
    %c0_34 = arith.constant 0 : index
    %c0_35 = arith.constant 0 : index
    %56 = vector.load %arg2[%c7, %c0_34, %c0_35] : memref<8x3x512xf32, #tpu.memory_space<vmem>>, vector<1x3x512xf32>
    %57 = vector.shape_cast %56 : vector<1x3x512xf32> to vector<3x512xf32>
    %cst_36 = arith.constant dense<0.000000e+00> : vector<3x3xf32>
    %58 = tpu.matmul %57, %57, %cst_36 {dimension_numbers = #tpu.dot_dimension_numbers<[1], [1], [0], [0], [0, 0, 1, 0], [], []>} : vector<3x512xf32>, vector<3x512xf32>, vector<3x3xf32> -> vector<3x3xf32>
    %59 = arith.addf %52, %58 : vector<3x3xf32>
    %cst_37 = arith.constant dense<0.000000e+00> : vector<3xf32>
    %60 = vector.multi_reduction <add>, %57, %cst_37 [1] : vector<3x512xf32> to vector<3xf32>
    %61 = vector.shape_cast %60 : vector<3xf32> to vector<3x1xf32>
    %62 = arith.addf %55, %61 : vector<3x1xf32>
    %c0_38 = arith.constant 0 : index
    %c0_39 = arith.constant 0 : index
    %c0_40 = arith.constant 0 : index
    %63 = vector.load %arg3[%c0_38, %c0_39, %c0_40] : memref<1x3x3xf32, #tpu.memory_space<vmem>>, vector<1x3x3xf32>
    %64 = vector.shape_cast %63 : vector<1x3x3xf32> to vector<3x3xf32>
    %65 = vector.shape_cast %59 : vector<3x3xf32> to vector<1x3x3xf32>
    tpu.vector_store %arg3[%c0_38, %c0_39, %c0_40], %65 {strides = array<i32>} : memref<1x3x3xf32, #tpu.memory_space<vmem>>, vector<1x3x3xf32>,
    %c0_41 = arith.constant 0 : index
    %c0_42 = arith.constant 0 : index
    %c0_43 = arith.constant 0 : index
    %66 = vector.load %arg4[%c0_41, %c0_42, %c0_43] : memref<1x3x1xf32, #tpu.memory_space<vmem>>, vector<1x3x1xf32>
    %67 = vector.shape_cast %66 : vector<1x3x1xf32> to vector<3x1xf32>
    %68 = vector.shape_cast %62 : vector<3x1xf32> to vector<1x3x1xf32>
    tpu.vector_store %arg4[%c0_41, %c0_42, %c0_43], %68 {strides = array<i32>} : memref<1x3x1xf32, #tpu.memory_space<vmem>>, vector<1x3x1xf32>,
    return
  }
  func.func @transform_0(%arg0: i32, %arg1: i32) -> (i32, i32, i32) {
    %c0_i32 = arith.constant 0 : i32
    %c0_i32_0 = arith.constant 0 : i32
    return %arg0, %c0_i32, %arg1 : i32, i32, i32
  }
  func.func @transform_1(%arg0: i32, %arg1: i32) -> (i32, i32, i32) {
    %c0_i32 = arith.constant 0 : i32
    %c0_i32_0 = arith.constant 0 : i32
    %c0_i32_1 = arith.constant 0 : i32
    return %arg0, %c0_i32, %c0_i32_0 : i32, i32, i32
  }
  func.func @transform_2(%arg0: i32, %arg1: i32) -> (i32, i32, i32) {
    %c0_i32 = arith.constant 0 : i32
    %c0_i32_0 = arith.constant 0 : i32
    %c0_i32_1 = arith.constant 0 : i32
    return %arg0, %c0_i32, %c0_i32_0 : i32, i32, i32
  }
}

</mosaic_0001>

<bundles_post_ra>
// kernel: tpu_custom_call.1
= control target key start
LH: loop header
LB: loop body
LE: loop exit
PB: predicated region body
PF: predicated region fallthrough
CT: control target
= control target key end

     0   :  { %vm138_vm0 = vcmask 1042432   ;;  %vm14_vm1 = vcmask 18432   ;;  %vm16_vm2 = vcmask 2048   ;;  %s1258_s0 = inlined_call_operand.vmem [shape: f32[8,3,512], index: 0, kind: input, shape index: {}]   ;;  %s1259_s1 = inlined_call_operand.vmem [shape: f32[1,3,3], index: 1, kind: output, shape index: {0}]   ;;  %s1260_s2 = inlined_call_operand.vmem [shape: f32[1,3,1], index: 2, kind: output, shape index: {1}]  }
   0x1   :  { %v21_v0 = vld [vmem:[%s1258_s0 + $0x8] sm:$0x77]  ;;  %v20_v1 = vld [vmem:[%s1258_s0] sm:$0x77]  ;;  %v1065_v10 = vld [vmem:[%s1258_s0 + $0x18] sm:$0x77] }
   0x2   :  { %26 = vst [vmem:[#allocation1 + $0x10] ss:$2 sm:$0xff] %v21_v0  ;;  %v1064_v11 = vld [vmem:[%s1258_s0 + $0x10] sm:$0x77]  ;;  %v1067_v24 = vld [vmem:[%s1258_s0 + $0x28] sm:$0x77] }
   0x3   :  { %24 = vst [vmem:[#allocation1] ss:$2 sm:$0xff] %v20_v1  ;;  %v1066_v25 = vld [vmem:[%s1258_s0 + $0x20] sm:$0x77]  ;;  %v1069_v38 = vld [vmem:[%s1258_s0 + $0x38] sm:$0x77] }
   0x4   :  { %v1068_v39 = vld [vmem:[%s1258_s0 + $0x30] sm:$0x77]  ;;  %v1071_v52 = vld [vmem:[%s1258_s0 + $0x48] sm:$0x77]  ;;  %v1070_v53 = vld [vmem:[%s1258_s0 + $0x40] sm:$0x77] }
   0x9   :  { %v29_v2 = vld.sshfl [vmem:[#allocation1 + $0x10] sm:$0xff pattern:$0x75316420]  ;;  %v30_v3 = vld.sshfl [vmem:[#allocation1 + $0x18] sm:$0xff pattern:$0x75316420] }
   0xa   :  { %37 = vst [vmem:[#allocation1 + $0x10] ss:$2 sm:$0xff] %v21_v0  ;;  %v27_v4 = vld.sshfl [vmem:[#allocation1] sm:$0xff pattern:$0x75316420] }
   0xb   :  { %v28_v5 = vld.sshfl [vmem:[#allocation1 + $0x8] sm:$0xff pattern:$0x75316420] }
   0xc   :  { %35 = vst [vmem:[#allocation1] ss:$2 sm:$0xff] %v20_v1 }
  0x11   :  { %v40_v6 = vld.sshfl [vmem:[#allocation1 + $0x10] sm:$0xff pattern:$0x75316420]  ;;  %v41_v7 = vld.sshfl [vmem:[#allocation1 + $0x18] sm:$0xff pattern:$0x75316420] }
  0x12   :  { %101 = vmatpush.xpose.msra.mxu2 %v40_v6  ;;  %121 = vmatpush.xpose.msra.mxu3 %v41_v7  ;;  %129 = vst [vmem:[#allocation1 + $0x10] ss:$2 sm:$0xff] %v21_v0 }
  0x13   :  { %v38_v8 = vld.sshfl [vmem:[#allocation1] sm:$0xff pattern:$0x75316420]  ;;  %v39_v9 = vld.sshfl [vmem:[#allocation1 + $0x8] sm:$0xff pattern:$0x75316420] }
  0x14   :  { %61 = vmatpush.xpose.msra.mxu0 %v38_v8  ;;  %81 = vmatpush.xpose.msra.mxu1 %v39_v9  ;;  %127 = vst [vmem:[#allocation1] ss:$2 sm:$0xff] %v20_v1 }
  0x15   :  { %102 = vmatmul.f32.vlgmr.msra.gmra.mxu2 %v29_v2  ;;  %122 = vmatmul.f32.vlgmr.msra.gmra.mxu3 %v30_v3  ;;  %v1073_v2 = vld [vmem:[%s1258_s0 + $0x58] sm:$0x77]  ;;  %v1072_v3 = vld [vmem:[%s1258_s0 + $0x50] sm:$0x77] }
  0x17   :  { %62 = vmatmul.f32.vlgmr.msra.gmra.mxu0 %v27_v4  ;;  %82 = vmatmul.f32.vlgmr.msra.gmra.mxu1 %v28_v5 }
  0x19   :  { %v1107_v12 = vld.sshfl [vmem:[#allocation1 + $0x10] sm:$0xff pattern:$0x75316420]  ;;  %v1109_v13 = vld.sshfl [vmem:[#allocation1 + $0x18] sm:$0xff pattern:$0x75316420] }
  0x1a   :  { %156 = vst [vmem:[#allocation1 + $0x10] ss:$2 sm:$0xff] %v1065_v10 }
  0x1b   :  { %v1111_v14 = vld.sshfl [vmem:[#allocation1] sm:$0xff pattern:$0x75316420]  ;;  %v1113_v15 = vld.sshfl [vmem:[#allocation1 + $0x8] sm:$0xff pattern:$0x75316420] }
  0x1c   :  { %154 = vst [vmem:[#allocation1] ss:$2 sm:$0xff] %v1064_v11 }
  0x21   :  { %v159_v16 = vld.sshfl [vmem:[#allocation1 + $0x10] sm:$0xff pattern:$0x75316420]  ;;  %v160_v17 = vld.sshfl [vmem:[#allocation1 + $0x18] sm:$0xff pattern:$0x75316420] }
  0x22   :  { %167 = vst [vmem:[#allocation1 + $0x10] ss:$2 sm:$0xff] %v1065_v10 }
  0x23   :  { %v157_v18 = vld.sshfl [vmem:[#allocation1] sm:$0xff pattern:$0x75316420]  ;;  %v158_v19 = vld.sshfl [vmem:[#allocation1 + $0x8] sm:$0xff pattern:$0x75316420] }
  0x24   :  { %165 = vst [vmem:[#allocation1] ss:$2 sm:$0xff] %v1064_v11 }
  0x29   :  { %v170_v20 = vld.sshfl [vmem:[#allocation1 + $0x10] sm:$0xff pattern:$0x75316420]  ;;  %v171_v21 = vld.sshfl [vmem:[#allocation1 + $0x18] sm:$0xff pattern:$0x75316420] }
  0x2a   :  { %231 = vmatpush.xpose.msrb.mxu2 %v170_v20  ;;  %251 = vmatpush.xpose.msrb.mxu3 %v171_v21  ;;  %259 = vst [vmem:[#allocation1 + $0x10] ss:$2 sm:$0xff] %v1065_v10  ;;  %v1168_v20 = vld [vmem:[%s1258_s0 + $0x68] sm:$0x77]  ;;  %v1173_v21 = vld [vmem:[%s1258_s0 + $0x60] sm:$0x77] }
  0x2b   :  { %v168_v22 = vld.sshfl [vmem:[#allocation1] sm:$0xff pattern:$0x75316420]  ;;  %v169_v23 = vld.sshfl [vmem:[#allocation1 + $0x8] sm:$0xff pattern:$0x75316420] }
  0x2c   :  { %191 = vmatpush.xpose.msrb.mxu0 %v168_v22  ;;  %211 = vmatpush.xpose.msrb.mxu1 %v169_v23  ;;  %257 = vst [vmem:[#allocation1] ss:$2 sm:$0xff] %v1064_v11  ;;  %v139_v22 = vsel %vm138_vm0, %v1111_v14, 0.0  ;;  %v140_v23 = vsel %vm138_vm0, %v1113_v15, 0.0 }
  0x2d   :  { %232 = vmatmul.f32.vlgmr.msrb.gmra.mxu2 %v159_v16  ;;  %252 = vmatmul.f32.vlgmr.msrb.gmra.mxu3 %v160_v17 }
  0x2f   :  { %192 = vmatmul.f32.vlgmr.msrb.gmra.mxu0 %v157_v18  ;;  %212 = vmatmul.f32.vlgmr.msrb.gmra.mxu1 %v158_v19 }
  0x31   :  { %v1121_v26 = vld.sshfl [vmem:[#allocation1 + $0x10] sm:$0xff pattern:$0x75316420]  ;;  %v1123_v27 = vld.sshfl [vmem:[#allocation1 + $0x18] sm:$0xff pattern:$0x75316420] }
  0x32   :  { %285 = vst [vmem:[#allocation1 + $0x10] ss:$2 sm:$0xff] %v1067_v24 }
  0x33   :  { %v1125_v28 = vld.sshfl [vmem:[#allocation1] sm:$0xff pattern:$0x75316420]  ;;  %v1127_v29 = vld.sshfl [vmem:[#allocation1 + $0x8] sm:$0xff pattern:$0x75316420] }
  0x34   :  { %283 = vst [vmem:[#allocation1] ss:$2 sm:$0xff] %v1066_v25 }
  0x39   :  { %v288_v30 = vld.sshfl [vmem:[#allocation1 + $0x10] sm:$0xff pattern:$0x75316420]  ;;  %v289_v31 = vld.sshfl [vmem:[#allocation1 + $0x18] sm:$0xff pattern:$0x75316420] }
  0x3a   :  { %296 = vst [vmem:[#allocation1 + $0x10] ss:$2 sm:$0xff] %v1067_v24 }
  0x3b   :  { %v286_v32 = vld.sshfl [vmem:[#allocation1] sm:$0xff pattern:$0x75316420]  ;;  %v287_v33 = vld.sshfl [vmem:[#allocation1 + $0x8] sm:$0xff pattern:$0x75316420] }
  0x3c   :  { %294 = vst [vmem:[#allocation1] ss:$2 sm:$0xff] %v1066_v25 }
  0x41   :  { %v299_v34 = vld.sshfl [vmem:[#allocation1 + $0x10] sm:$0xff pattern:$0x75316420]  ;;  %v300_v35 = vld.sshfl [vmem:[#allocation1 + $0x18] sm:$0xff pattern:$0x75316420] }
  0x42   :  { %360 = vmatpush.xpose.msra.mxu2 %v299_v34  ;;  %380 = vmatpush.xpose.msra.mxu3 %v300_v35  ;;  %388 = vst [vmem:[#allocation1 + $0x10] ss:$2 sm:$0xff] %v1067_v24  ;;  %v144_v35 = vsel %vm138_vm0, %v1109_v13, 0.0 }
  0x43   :  { %v297_v36 = vld.sshfl [vmem:[#allocation1] sm:$0xff pattern:$0x75316420]  ;;  %v298_v37 = vld.sshfl [vmem:[#allocation1 + $0x8] sm:$0xff pattern:$0x75316420] }
  0x44   :  { %320 = vmatpush.xpose.msra.mxu0 %v297_v36  ;;  %340 = vmatpush.xpose.msra.mxu1 %v298_v37  ;;  %386 = vst [vmem:[#allocation1] ss:$2 sm:$0xff] %v1066_v25 }
  0x45   :  { %361 = vmatmul.f32.vlgmr.msra.gmra.mxu2 %v288_v30  ;;  %381 = vmatmul.f32.vlgmr.msra.gmra.mxu3 %v289_v31  ;;  %v141_v30 = vadd.f32 %v140_v23, %v139_v22  ;;  %v142_v31 = vsel %vm138_vm0, %v1107_v12, 0.0  ;;  %v1079_v23 = vmov 0.0  }
  0x46   :  { %15 = vst.msk [vmem:[%s1259_s1] sm:$0x7] %vm14_vm1, %v1079_v23 }
  0x47   :  { %321 = vmatmul.f32.vlgmr.msra.gmra.mxu0 %v286_v32  ;;  %341 = vmatmul.f32.vlgmr.msra.gmra.mxu1 %v287_v33  ;;  %v143_v34 = vadd.f32 %v142_v31, %v141_v30  ;;  %17 = vst.msk [vmem:[%s1260_s2] sm:$0x7] %vm16_vm2, %v1079_v23 }
  0x49   :  { %v1135_v40 = vld.sshfl [vmem:[#allocation1 + $0x10] sm:$0xff pattern:$0x75316420]  ;;  %v1137_v41 = vld.sshfl [vmem:[#allocation1 + $0x18] sm:$0xff pattern:$0x75316420]  ;;  %v145_v36 = vadd.f32 %v144_v35, %v143_v34 }
  0x4a   :  { %414 = vst [vmem:[#allocation1 + $0x10] ss:$2 sm:$0xff] %v1069_v38 }
  0x4b   :  { %v1139_v42 = vld.sshfl [vmem:[#allocation1] sm:$0xff pattern:$0x75316420]  ;;  %v1141_v43 = vld.sshfl [vmem:[#allocation1 + $0x8] sm:$0xff pattern:$0x75316420]  ;;  %146 = vadd.xlane.f32.xlu0 %v145_v36 }
  0x4c   :  { %412 = vst [vmem:[#allocation1] ss:$2 sm:$0xff] %v1068_v39  ;;  %v397_v14 = vsel %vm138_vm0, %v1139_v42, 0.0  ;;  %v398_v15 = vsel %vm138_vm0, %v1141_v43, 0.0  ;;  %v268_v42 = vsel %vm138_vm0, %v1125_v28, 0.0 }
  0x4d   :  { %v399_v37 = vadd.f32 %v398_v15, %v397_v14 }
  0x51   :  { %v417_v44 = vld.sshfl [vmem:[#allocation1 + $0x10] sm:$0xff pattern:$0x75316420]  ;;  %v418_v45 = vld.sshfl [vmem:[#allocation1 + $0x18] sm:$0xff pattern:$0x75316420] }
  0x52   :  { %425 = vst [vmem:[#allocation1 + $0x10] ss:$2 sm:$0xff] %v1069_v38 }
  0x53   :  { %v415_v46 = vld.sshfl [vmem:[#allocation1] sm:$0xff pattern:$0x75316420]  ;;  %v416_v47 = vld.sshfl [vmem:[#allocation1 + $0x8] sm:$0xff pattern:$0x75316420] }
  0x54   :  { %423 = vst [vmem:[#allocation1] ss:$2 sm:$0xff] %v1068_v39 }
  0x59   :  { %v428_v48 = vld.sshfl [vmem:[#allocation1 + $0x10] sm:$0xff pattern:$0x75316420]  ;;  %v429_v49 = vld.sshfl [vmem:[#allocation1 + $0x18] sm:$0xff pattern:$0x75316420] }
  0x5a   :  { %489 = vmatpush.xpose.msrb.mxu2 %v428_v48  ;;  %509 = vmatpush.xpose.msrb.mxu3 %v429_v49  ;;  %517 = vst [vmem:[#allocation1 + $0x10] ss:$2 sm:$0xff] %v1069_v38  ;;  %v400_v38 = vsel %vm138_vm0, %v1135_v40, 0.0  ;;  %v269_v48 = vsel %vm138_vm0, %v1127_v29, 0.0 }
  0x5b   :  { %v426_v50 = vld.sshfl [vmem:[#allocation1] sm:$0xff pattern:$0x75316420]  ;;  %v427_v51 = vld.sshfl [vmem:[#allocation1 + $0x8] sm:$0xff pattern:$0x75316420]  ;;  %v401_v12 = vadd.f32 %v400_v38, %v399_v37 }
  0x5c   :  { %449 = vmatpush.xpose.msrb.mxu0 %v426_v50  ;;  %469 = vmatpush.xpose.msrb.mxu1 %v427_v51  ;;  %515 = vst [vmem:[#allocation1] ss:$2 sm:$0xff] %v1068_v39  ;;  %v402_v39 = vsel %vm138_vm0, %v1137_v41, 0.0  ;;  %v271_v41 = vsel %vm138_vm0, %v1121_v26, 0.0 }
  0x5d   :  { %490 = vmatmul.f32.vlgmr.msrb.gmra.mxu2 %v417_v44  ;;  %510 = vmatmul.f32.vlgmr.msrb.gmra.mxu3 %v418_v45  ;;  %v403_v43 = vadd.f32 %v402_v39, %v401_v12 }
  0x5f   :  { %450 = vmatmul.f32.vlgmr.msrb.gmra.mxu0 %v415_v46  ;;  %470 = vmatmul.f32.vlgmr.msrb.gmra.mxu1 %v416_v47 }
  0x60   :  { %404 = vadd.xlane.f32.xlu1 %v403_v43 }
  0x61   :  { %v1149_v54 = vld.sshfl [vmem:[#allocation1 + $0x10] sm:$0xff pattern:$0x75316420]  ;;  %v1151_v55 = vld.sshfl [vmem:[#allocation1 + $0x18] sm:$0xff pattern:$0x75316420] }
  0x62   :  { %543 = vst [vmem:[#allocation1 + $0x10] ss:$2 sm:$0xff] %v1071_v52 }
  0x63   :  { %v1153_v56 = vld.sshfl [vmem:[#allocation1] sm:$0xff pattern:$0x75316420]  ;;  %v1155_v57 = vld.sshfl [vmem:[#allocation1 + $0x8] sm:$0xff pattern:$0x75316420] }
  0x64   :  { %541 = vst [vmem:[#allocation1] ss:$2 sm:$0xff] %v1070_v53  ;;  %v527_v29 = vsel %vm138_vm0, %v1155_v57, 0.0 }
  0x69   :  { %v546_v58 = vld.sshfl [vmem:[#allocation1 + $0x10] sm:$0xff pattern:$0x75316420]  ;;  %v547_v59 = vld.sshfl [vmem:[#allocation1 + $0x18] sm:$0xff pattern:$0x75316420] }
  0x6a   :  { %554 = vst [vmem:[#allocation1 + $0x10] ss:$2 sm:$0xff] %v1071_v52 }
  0x6b   :  { %v544_v60 = vld.sshfl [vmem:[#allocation1] sm:$0xff pattern:$0x75316420]  ;;  %v545_v61 = vld.sshfl [vmem:[#allocation1 + $0x8] sm:$0xff pattern:$0x75316420] }
  0x6c   :  { %552 = vst [vmem:[#allocation1] ss:$2 sm:$0xff] %v1070_v53 }
  0x71   :  { %v557_v62 = vld.sshfl [vmem:[#allocation1 + $0x10] sm:$0xff pattern:$0x75316420]  ;;  %v558_v63 = vld.sshfl [vmem:[#allocation1 + $0x18] sm:$0xff pattern:$0x75316420] }
  0x72   :  { %618 = vmatpush.xpose.msra.mxu2 %v557_v62  ;;  %638 = vmatpush.xpose.msra.mxu3 %v558_v63  ;;  %646 = vst [vmem:[#allocation1 + $0x10] ss:$2 sm:$0xff] %v1071_v52  ;;  %v270_v52 = vadd.f32 %v269_v48, %v268_v42 }
  0x73   :  { %v555_v0 = vld.sshfl [vmem:[#allocation1] sm:$0xff pattern:$0x75316420]  ;;  %v556_v1 = vld.sshfl [vmem:[#allocation1 + $0x8] sm:$0xff pattern:$0x75316420] }
  0x74   :  { %578 = vmatpush.xpose.msra.mxu0 %v555_v0  ;;  %598 = vmatpush.xpose.msra.mxu1 %v556_v1  ;;  %644 = vst [vmem:[#allocation1] ss:$2 sm:$0xff] %v1070_v53  ;;  %v273_v53 = vsel %vm138_vm0, %v1123_v27, 0.0  ;;  %v531_v0 = vsel %vm138_vm0, %v1151_v55, 0.0 }
  0x75   :  { %619 = vmatmul.f32.vlgmr.msra.gmra.mxu2 %v546_v58  ;;  %639 = vmatmul.f32.vlgmr.msra.gmra.mxu3 %v547_v59  ;;  %v526_v58 = vsel %vm138_vm0, %v1153_v56, 0.0  ;;  %v272_v59 = vadd.f32 %v271_v41, %v270_v52 }
  0x77   :  { %579 = vmatmul.f32.vlgmr.msra.gmra.mxu0 %v544_v60  ;;  %599 = vmatmul.f32.vlgmr.msra.gmra.mxu1 %v545_v61  ;;  %v528_v60 = vadd.f32 %v527_v29, %v526_v58  ;;  %v529_v61 = vsel %vm138_vm0, %v1149_v54, 0.0  ;;  %v274_v62 = vadd.f32 %v273_v53, %v272_v59 }
  0x79   :  { %v649_v4 = vld.sshfl [vmem:[#allocation1 + $0x10] sm:$0xff pattern:$0x75316420]  ;;  %v1163_v5 = vld.sshfl [vmem:[#allocation1 + $0x18] sm:$0xff pattern:$0x75316420]  ;;  %v530_v63 = vadd.f32 %v529_v61, %v528_v60  ;;  %275 = vadd.xlane.f32.xlu0 %v274_v62 }
  0x7a   :  { %672 = vst [vmem:[#allocation1 + $0x10] ss:$2 sm:$0xff] %v1073_v2  ;;  %v658_v40 = vsel %vm138_vm0, %v649_v4, 0.0  ;;  %v660_v28 = vsel %vm138_vm0, %v1163_v5, 0.0 }
  0x7b   :  { %v647_v6 = vld.sshfl [vmem:[#allocation1] sm:$0xff pattern:$0x75316420]  ;;  %v648_v7 = vld.sshfl [vmem:[#allocation1 + $0x8] sm:$0xff pattern:$0x75316420] }
  0x7c   :  { %670 = vst [vmem:[#allocation1] ss:$2 sm:$0xff] %v1072_v3  ;;  %v655_v44 = vsel %vm138_vm0, %v647_v6, 0.0  ;;  %v656_v13 = vsel %vm138_vm0, %v648_v7, 0.0 }
  0x7d   :  { %v657_v47 = vadd.f32 %v656_v13, %v655_v44 }
  0x7f   :  { %v659_v51 = vadd.f32 %v658_v40, %v657_v47 }
  0x81   :  { %v675_v8 = vld.sshfl [vmem:[#allocation1 + $0x10] sm:$0xff pattern:$0x75316420]  ;;  %v676_v9 = vld.sshfl [vmem:[#allocation1 + $0x18] sm:$0xff pattern:$0x75316420]  ;;  %v661_v26 = vadd.f32 %v660_v28, %v659_v51 }
  0x82   :  { %683 = vst [vmem:[#allocation1 + $0x10] ss:$2 sm:$0xff] %v1073_v2 }
  0x83   :  { %v673_v10 = vld.sshfl [vmem:[#allocation1] sm:$0xff pattern:$0x75316420]  ;;  %v674_v11 = vld.sshfl [vmem:[#allocation1 + $0x8] sm:$0xff pattern:$0x75316420]  ;;  %662 = vadd.xlane.f32.xlu2 %v661_v26 }
  0x84   :  { %681 = vst [vmem:[#allocation1] ss:$2 sm:$0xff] %v1072_v3 }
  0x89   :  { %v686_v16 = vld.sshfl [vmem:[#allocation1 + $0x10] sm:$0xff pattern:$0x75316420]  ;;  %v687_v17 = vld.sshfl [vmem:[#allocation1 + $0x18] sm:$0xff pattern:$0x75316420] }
  0x8a   :  { %747 = vmatpush.xpose.msrb.mxu2 %v686_v16  ;;  %767 = vmatpush.xpose.msrb.mxu3 %v687_v17  ;;  %775 = vst [vmem:[#allocation1 + $0x10] ss:$2 sm:$0xff] %v1073_v2 }
  0x8b   :  { %v684_v18 = vld.sshfl [vmem:[#allocation1] sm:$0xff pattern:$0x75316420]  ;;  %v685_v19 = vld.sshfl [vmem:[#allocation1 + $0x8] sm:$0xff pattern:$0x75316420] }
  0x8c   :  { %707 = vmatpush.xpose.msrb.mxu0 %v684_v18  ;;  %727 = vmatpush.xpose.msrb.mxu1 %v685_v19  ;;  %773 = vst [vmem:[#allocation1] ss:$2 sm:$0xff] %v1072_v3  ;;  %v532_v3 = vadd.f32 %v531_v0, %v530_v63  ;;  %v19_v63 = vld [vmem:[%s1260_s2] sm:$0x7] }
  0x8d   :  { %748 = vmatmul.f32.vlgmr.msrb.gmra.mxu2 %v675_v8  ;;  %768 = vmatmul.f32.vlgmr.msrb.gmra.mxu3 %v676_v9  ;;  %v1077_v8 = vld [vmem:[%s1258_s0 + $0x78] sm:$0x77]  ;;  %v1076_v9 = vld [vmem:[%s1258_s0 + $0x70] sm:$0x77] }
  0x8e   :  { %533 = vadd.xlane.f32.xlu1 %v532_v3 }
  0x8f   :  { %708 = vmatmul.f32.vlgmr.msrb.gmra.mxu0 %v673_v10  ;;  %728 = vmatmul.f32.vlgmr.msrb.gmra.mxu1 %v674_v11 }
  0x91   :  { %v778_v24 = vld.sshfl [vmem:[#allocation1 + $0x10] sm:$0xff pattern:$0x75316420]  ;;  %v779_v25 = vld.sshfl [vmem:[#allocation1 + $0x18] sm:$0xff pattern:$0x75316420] }
  0x92   :  { %801 = vst [vmem:[#allocation1 + $0x10] ss:$2 sm:$0xff] %v1168_v20  ;;  %v787_v56 = vsel %vm138_vm0, %v778_v24, 0.0  ;;  %v789_v54 = vsel %vm138_vm0, %v779_v25, 0.0 }
  0x93   :  { %v776_v32 = vld.sshfl [vmem:[#allocation1] sm:$0xff pattern:$0x75316420]  ;;  %v777_v33 = vld.sshfl [vmem:[#allocation1 + $0x8] sm:$0xff pattern:$0x75316420] }
  0x94   :  { %799 = vst [vmem:[#allocation1] ss:$2 sm:$0xff] %v1173_v21  ;;  %v784_v27 = vsel %vm138_vm0, %v776_v32, 0.0  ;;  %v785_v1 = vsel %vm138_vm0, %v777_v33, 0.0  ;;  %v63_v47 = vpop.f32.mrf.mxu0  ;;  %v83_v40 = vpop.f32.mrf.mxu1 }
  0x95   :  { %v786_v4 = vadd.f32 %v785_v1, %v784_v27  ;;  %v84_v0 = vadd.f32 %v83_v40, %v63_v47 }
  0x97   :  { %v788_v55 = vadd.f32 %v787_v56, %v786_v4 }
  0x98   :  { %v103_v48 = vpop.f32.mrf.mxu2  ;;  %v123_v41 = vpop.f32.mrf.mxu3 }
  0x99   :  { %v804_v45 = vld.sshfl [vmem:[#allocation1 + $0x10] sm:$0xff pattern:$0x75316420]  ;;  %v805_v46 = vld.sshfl [vmem:[#allocation1 + $0x18] sm:$0xff pattern:$0x75316420]  ;;  %v790_v7 = vadd.f32 %v789_v54, %v788_v55  ;;  %v104_v3 = vadd.f32 %v103_v48, %v84_v0 }
  0x9a   :  { %812 = vst [vmem:[#allocation1 + $0x10] ss:$2 sm:$0xff] %v1168_v20 }
  0x9b   :  { %v802_v49 = vld.sshfl [vmem:[#allocation1] sm:$0xff pattern:$0x75316420]  ;;  %v803_v50 = vld.sshfl [vmem:[#allocation1 + $0x8] sm:$0xff pattern:$0x75316420]  ;;  %791 = vadd.xlane.f32.xlu2 %v790_v7  ;;  %v124_v55 = vadd.f32 %v123_v41, %v104_v3 }
  0x9c   :  { %810 = vst [vmem:[#allocation1] ss:$2 sm:$0xff] %v1173_v21 }
  0xa1   :  { %v815_v2 = vld.sshfl [vmem:[#allocation1 + $0x10] sm:$0xff pattern:$0x75316420]  ;;  %v816_v57 = vld.sshfl [vmem:[#allocation1 + $0x18] sm:$0xff pattern:$0x75316420] }
  0xa2   :  { %876 = vmatpush.xpose.msra.mxu2 %v815_v2  ;;  %896 = vmatpush.xpose.msra.mxu3 %v816_v57  ;;  %904 = vst [vmem:[#allocation1 + $0x10] ss:$2 sm:$0xff] %v1168_v20 }
  0xa3   :  { %v813_v5 = vld.sshfl [vmem:[#allocation1] sm:$0xff pattern:$0x75316420]  ;;  %v814_v6 = vld.sshfl [vmem:[#allocation1 + $0x8] sm:$0xff pattern:$0x75316420] }
  0xa4   :  { %836 = vmatpush.xpose.msra.mxu0 %v813_v5  ;;  %856 = vmatpush.xpose.msra.mxu1 %v814_v6  ;;  %902 = vst [vmem:[#allocation1] ss:$2 sm:$0xff] %v1173_v21 }
  0xa5   :  { %877 = vmatmul.f32.vlgmr.msra.gmra.mxu2 %v804_v45  ;;  %897 = vmatmul.f32.vlgmr.msra.gmra.mxu3 %v805_v46 }
  0xa7   :  { %837 = vmatmul.f32.vlgmr.msra.gmra.mxu0 %v802_v49  ;;  %857 = vmatmul.f32.vlgmr.msra.gmra.mxu1 %v803_v50 }
  0xa9   :  { %v907_v10 = vld.sshfl [vmem:[#allocation1 + $0x10] sm:$0xff pattern:$0x75316420]  ;;  %v908_v11 = vld.sshfl [vmem:[#allocation1 + $0x18] sm:$0xff pattern:$0x75316420] }
  0xaa   :  { %930 = vst [vmem:[#allocation1 + $0x10] ss:$2 sm:$0xff] %v1077_v8  ;;  %v916_v20 = vsel %vm138_vm0, %v907_v10, 0.0  ;;  %v918_v22 = vsel %vm138_vm0, %v908_v11, 0.0  ;;  %v18_v10 = vld [vmem:[%s1259_s1] sm:$0x7] }
  0xab   :  { %v905_v16 = vld.sshfl [vmem:[#allocation1] sm:$0xff pattern:$0x75316420]  ;;  %v906_v17 = vld.sshfl [vmem:[#allocation1 + $0x8] sm:$0xff pattern:$0x75316420] }
  0xac   :  { %928 = vst [vmem:[#allocation1] ss:$2 sm:$0xff] %v1076_v9  ;;  %v913_v18 = vsel %vm138_vm0, %v905_v16, 0.0  ;;  %v914_v19 = vsel %vm138_vm0, %v906_v17, 0.0  ;;  %v193_v49 = vpop.f32.mrf.mxu0  ;;  %v213_v50 = vpop.f32.mrf.mxu1 }
  0xad   :  { %v915_v21 = vadd.f32 %v914_v19, %v913_v18  ;;  %v214_v4 = vadd.f32 %v213_v50, %v193_v49  ;;  %v126_v19 = vadd.f32 %v124_v55, %v18_v10 }
  0xaf   :  { %v917_v24 = vadd.f32 %v916_v20, %v915_v21 }
  0xb0   :  { %v233_v51 = vpop.f32.mrf.mxu2  ;;  %v253_v52 = vpop.f32.mrf.mxu3 }
  0xb1   :  { %v933_v25 = vld.sshfl [vmem:[#allocation1 + $0x10] sm:$0xff pattern:$0x75316420]  ;;  %v934_v30 = vld.sshfl [vmem:[#allocation1 + $0x18] sm:$0xff pattern:$0x75316420]  ;;  %v919_v31 = vadd.f32 %v918_v22, %v917_v24  ;;  %v234_v7 = vadd.f32 %v233_v51, %v214_v4 }
  0xb2   :  { %941 = vst [vmem:[#allocation1 + $0x10] ss:$2 sm:$0xff] %v1077_v8 }
  0xb3   :  { %v931_v32 = vld.sshfl [vmem:[#allocation1] sm:$0xff pattern:$0x75316420]  ;;  %v932_v33 = vld.sshfl [vmem:[#allocation1 + $0x8] sm:$0xff pattern:$0x75316420]  ;;  %920 = vadd.xlane.f32.xlu0 %v919_v31  ;;  %v254_v20 = vadd.f32 %v253_v52, %v234_v7 }
  0xb4   :  { %939 = vst [vmem:[#allocation1] ss:$2 sm:$0xff] %v1076_v9 }
  0xb9   :  { %v944_v34 = vld.sshfl [vmem:[#allocation1 + $0x10] sm:$0xff pattern:$0x75316420]  ;;  %v945_v35 = vld.sshfl [vmem:[#allocation1 + $0x18] sm:$0xff pattern:$0x75316420] }
  0xba   :  { %1005 = vmatpush.xpose.msrb.mxu2 %v944_v34  ;;  %1025 = vmatpush.xpose.msrb.mxu3 %v945_v35  ;;  %1033 = vst [vmem:[#allocation1 + $0x10] ss:$2 sm:$0xff] %v1077_v8 }
  0xbb   :  { %v942_v14 = vld.sshfl [vmem:[#allocation1] sm:$0xff pattern:$0x75316420]  ;;  %v943_v15 = vld.sshfl [vmem:[#allocation1 + $0x8] sm:$0xff pattern:$0x75316420] }
  0xbc   :  { %965 = vmatpush.xpose.msrb.mxu0 %v942_v14  ;;  %985 = vmatpush.xpose.msrb.mxu1 %v943_v15  ;;  %1031 = vst [vmem:[#allocation1] ss:$2 sm:$0xff] %v1076_v9 }
  0xbd   :  { %1006 = vmatmul.f32.vlgmr.msrb.gmra.mxu2 %v933_v25  ;;  %1026 = vmatmul.f32.vlgmr.msrb.gmra.mxu3 %v934_v30  ;;  %v256_v30 = vadd.f32 %v254_v20, %v126_v19 }
  0xbe   :  { %v147_v60 = vpop.xlane.xlu0 %146 }
  0xbf   :  { %966 = vmatmul.f32.vlgmr.msrb.gmra.mxu0 %v931_v32  ;;  %986 = vmatmul.f32.vlgmr.msrb.gmra.mxu1 %v932_v33  ;;  %v148_v2 = vadd.f32 %v147_v60, %v19_v63 }
  0xc1   :  { %v1036_v36 = vld.sshfl [vmem:[#allocation1 + $0x10] sm:$0xff pattern:$0x75316420]  ;;  %v1037_v37 = vld.sshfl [vmem:[#allocation1 + $0x18] sm:$0xff pattern:$0x75316420] }
  0xc2   :  { %v1045_v13 = vsel %vm138_vm0, %v1036_v36, 0.0  ;;  %v1047_v45 = vsel %vm138_vm0, %v1037_v37, 0.0 }
  0xc3   :  { %v1034_v38 = vld.sshfl [vmem:[#allocation1] sm:$0xff pattern:$0x75316420]  ;;  %v1035_v12 = vld.sshfl [vmem:[#allocation1 + $0x8] sm:$0xff pattern:$0x75316420] }
  0xc4   :  { %v1042_v39 = vsel %vm138_vm0, %v1034_v38, 0.0  ;;  %v1043_v44 = vsel %vm138_vm0, %v1035_v12, 0.0  ;;  %v322_v28 = vpop.f32.mrf.mxu0  ;;  %v342_v53 = vpop.f32.mrf.mxu1 }
  0xc5   :  { %v1044_v42 = vadd.f32 %v1043_v44, %v1042_v39  ;;  %v343_v8 = vadd.f32 %v342_v53, %v322_v28 }
  0xc7   :  { %v1046_v46 = vadd.f32 %v1045_v13, %v1044_v42 }
  0xc8   :  { %v362_v58 = vpop.f32.mrf.mxu2  ;;  %v382_v29 = vpop.f32.mrf.mxu3 }
  0xc9   :  { %v1048_v43 = vadd.f32 %v1047_v45, %v1046_v46  ;;  %v363_v21 = vadd.f32 %v362_v58, %v343_v8 }
  0xcb   :  { %1049 = vadd.xlane.f32.xlu1 %v1048_v43  ;;  %v383_v31 = vadd.f32 %v382_v29, %v363_v21 }
  0xcd   :  { %v385_v36 = vadd.f32 %v383_v31, %v256_v30 }
  0xd3   :  { %v405_v56 = vpop.xlane.xlu1 %404 }
  0xdc   :  { %v451_v26 = vpop.f32.mrf.mxu0  ;;  %v471_v59 = vpop.f32.mrf.mxu1 }
  0xdd   :  { %v472_v22 = vadd.f32 %v471_v59, %v451_v26 }
  0xe0   :  { %v491_v61 = vpop.f32.mrf.mxu2  ;;  %v511_v62 = vpop.f32.mrf.mxu3 }
  0xe1   :  { %v492_v32 = vadd.f32 %v491_v61, %v472_v22 }
  0xe3   :  { %v512_v37 = vadd.f32 %v511_v62, %v492_v32 }
  0xe5   :  { %v514_v46 = vadd.f32 %v512_v37, %v385_v36 }
  0xec   :  { %v276_v57 = vpop.xlane.xlu0 %275 }
  0xed   :  { %v277_v6 = vadd.f32 %v276_v57, %v148_v2 }
  0xef   :  { %v406_v16 = vadd.f32 %v405_v56, %v277_v6 }
  0xf4   :  { %v580_v27 = vpop.f32.mrf.mxu0  ;;  %v600_v1 = vpop.f32.mrf.mxu1 }
  0xf5   :  { %v601_v33 = vadd.f32 %v600_v1, %v580_v27 }
  0xf6   :  { %v663_v9 = vpop.xlane.xlu2 %662 }
  0xf8   :  { %v620_v54 = vpop.f32.mrf.mxu2  ;;  %v640_v5 = vpop.f32.mrf.mxu3 }
  0xf9   :  { %v621_v38 = vadd.f32 %v620_v54, %v601_v33 }
  0xfb   :  { %v641_v43 = vadd.f32 %v640_v5, %v621_v38 }
  0xfd   :  { %v643_v50 = vadd.f32 %v641_v43, %v514_v46 }
 0x101   :  { %v534_v18 = vpop.xlane.xlu1 %533 }
 0x102   :  { %v535_v23 = vadd.f32 %v534_v18, %v406_v16 }
 0x104   :  { %v664_v35 = vadd.f32 %v663_v9, %v535_v23 }
 0x10c   :  { %v709_v11 = vpop.f32.mrf.mxu0  ;;  %v729_v17 = vpop.f32.mrf.mxu1 }
 0x10d   :  { %v730_v12 = vadd.f32 %v729_v17, %v709_v11 }
 0x10e   :  { %v792_v34 = vpop.xlane.xlu2 %791 }
 0x10f   :  { %v793_v44 = vadd.f32 %v792_v34, %v664_v35 }
 0x110   :  { %v749_v24 = vpop.f32.mrf.mxu2  ;;  %v769_v25 = vpop.f32.mrf.mxu3 }
 0x111   :  { %v750_v47 = vadd.f32 %v749_v24, %v730_v12 }
 0x113   :  { %v770_v51 = vadd.f32 %v769_v25, %v750_v47 }
 0x115   :  { %v772_v59 = vadd.f32 %v770_v51, %v643_v50 }
 0x124   :  { %v838_v14 = vpop.f32.mrf.mxu0  ;;  %v858_v15 = vpop.f32.mrf.mxu1 }
 0x125   :  { %v859_v39 = vadd.f32 %v858_v15, %v838_v14 }
 0x126   :  { %v921_v13 = vpop.xlane.xlu0 %920 }
 0x127   :  { %v922_v48 = vadd.f32 %v921_v13, %v793_v44 }
 0x128   :  { %v878_v42 = vpop.f32.mrf.mxu2  ;;  %v898_v45 = vpop.f32.mrf.mxu3 }
 0x129   :  { %v879_v40 = vadd.f32 %v878_v42, %v859_v39 }
 0x12b   :  { %v899_v53 = vadd.f32 %v898_v45, %v879_v40 }
 0x12d   :  { %v901_v61 = vadd.f32 %v899_v53, %v772_v59 }
 0x13c   :  { %v967_v41 = vpop.f32.mrf.mxu0  ;;  %v987_v49 = vpop.f32.mrf.mxu1 }
 0x13d   :  { %v988_v52 = vadd.f32 %v987_v49, %v967_v41 }
 0x13e   :  { %v1050_v28 = vpop.xlane.xlu1 %1049 }
 0x13f   :  { %v1051_v58 = vadd.f32 %v1050_v28, %v922_v48 }
 0x140   :  { %v1007_v29 = vpop.f32.mrf.mxu2  ;;  %v1027_v26 = vpop.f32.mrf.mxu3 }
 0x141   :  { %v1008_v60 = vadd.f32 %v1007_v29, %v988_v52  ;;  %1055 = vst.msk [vmem:[%s1260_s2] sm:$0x7] %vm16_vm2, %v1051_v58 }
 0x143   :  { %v1028_v62 = vadd.f32 %v1027_v26, %v1008_v60 }
 0x145   :  { %v1030_v63 = vadd.f32 %v1028_v62, %v901_v61 }
 0x147   :  { %1053 = vst.msk [vmem:[%s1259_s1] sm:$0x7] %vm14_vm1, %v1030_v63 }

</bundles_post_ra>
